<compile_context>
chip_gen: v7x
topology: tpu7x:2x2x1
jax: 0.10.0
libtpu: 0.0.40
codegen_flags: <defaults>
</compile_context>

<pallas_src>
import functools

import jax
import jax.numpy as jnp
from jax import lax
from jax.experimental import pallas as pl
from jax.experimental.pallas import tpu as pltpu


def _rise_kernel(masks_ref, xproj_ref, b_ref, sal_part_ref, p_ref, *, n_targets):
    """One (core, N-tile) grid step.

    masks_ref    : (tile_n, HW) bf16  streamed mask tile (double-buffered)
    xproj_ref    : (T+1, HW)    bf16  class-projected image, augmented zero row
    b_ref        : (T+1, 1)     f32   HW*b_target, augmented with a 1
    sal_part_ref : (T+1, HW)    f32   per-core resident accumulator (output slab)
    p_ref        : (T, tile_n)  f32   lane-dense per-tile target scores
    """
    i = pl.program_id(1)                       # N-tile index (reduction axis)

    @pl.when(i == 0)
    def _init():
        sal_part_ref[...] = jnp.zeros_like(sal_part_ref)

    masks = masks_ref[...]                                        # (tile_n, HW) bf16

    # p_aug[t, n] = sum_hw xproj[t, hw] * masks[n, hw] + b_aug[t]
    #   rows 0..T-1 : per-mask target scores for this tile
    #   row  T      : constant 1 (zero xproj row + bias 1)
    p_aug = lax.dot_general(xproj_ref[...], masks,
                            (((1,), (1,)), ((), ())),
                            preferred_element_type=jnp.float32) + b_ref[...]

    p_ref[...] = p_aug[:n_targets, :]                             # lane-dense store

    # sal_part[t, hw] += sum_n p_aug[t, n] * masks[n, hw]
    #   rows 0..T-1 : unnormalized saliency partial sums
    #   row  T      : partial mask_sum[hw]  (free: same MXU matmul)
    sal_part_ref[...] += lax.dot_general(p_aug.astype(masks.dtype), masks,
                                         (((1,), (0,)), ((), ())),
                                         preferred_element_type=jnp.float32)


@functools.partial(jax.jit, static_argnames=("target", "tile_n", "num_cores"))
def rise_sweep_forward(x, masks, w_full, b_full, *, target, tile_n=256, num_cores=2):
    """x: (1, C, H, W); masks: (N, 1, H, W); model = 1x1 conv (w_full, b_full)."""
    if isinstance(target, int):
        target = (target,)
    target = tuple(target)

    _, C, H, W = x.shape
    N = masks.shape[0]
    HW = H * W
    T = len(target)

    x_flat = x.reshape(C, HW).astype(jnp.float32)
    masks_flat = masks.reshape(N, HW)

    # Pad N so it splits evenly over cores * tiles.  Zero-mask padding rows are
    # harmless: they contribute 0 to both the saliency and mask_sum matmuls;
    # their (bias-only) p rows are sliced off below.
    chunk = num_cores * tile_n
    n_pad = pl.cdiv(N, chunk) * chunk
    if n_pad != N:
        masks_flat = jnp.pad(masks_flat, ((0, n_pad - N), (0, 0)))
    tiles_per_core = n_pad // chunk

    # bf16 mask stream is lossless ({0,1} values) and halves the HBM traffic of
    # the only large streamed operand.
    masks_bf16 = masks_flat.astype(jnp.bfloat16)

    tgt = jnp.asarray(target)
    w_t = w_full[tgt].astype(jnp.float32)                         # (T, C)
    b_t = b_full[tgt].astype(jnp.float32)                         # (T,)

    # Hoisted class projection (tiny XLA matmul): xproj[t,hw] = sum_c w[t,c]*x[c,hw],
    # augmented with a zero row so the saliency matmul also emits mask_sum.
    xproj = w_t @ x_flat                                          # (T, HW)
    xproj_aug = jnp.concatenate([xproj, jnp.zeros((1, HW), jnp.float32)], axis=0)
    xproj_aug = xproj_aug.astype(jnp.bfloat16)                    # (T+1, HW)

    b_aug = jnp.concatenate([(float(HW) * b_t).reshape(T, 1),
                             jnp.ones((1, 1), jnp.float32)], axis=0)  # (T+1, 1)

    # VMEM budget: double-buffered bf16 mask tile + constants + outputs, with 2x
    # margin; keep inside v7x's 64 MiB physical VMEM.
    est = (2 * tile_n * HW * 2                      # masks tiles (bf16, 2 buffers)
           + 2 * ((T + 1) * HW * 2 + (T + 1) * 4)   # xproj + bias
           + 2 * ((T + 1) * HW * 4 + T * tile_n * 4))  # sal slab + p blocks
    vmem_limit = int(min(max(2 * est, 16 * 1024 * 1024), 64 * 1024 * 1024))

    cost = pl.CostEstimate(
        flops=4 * (T + 1) * n_pad * HW,             # two (T+1, n, HW) matmuls
        transcendentals=0,
        bytes_accessed=(n_pad * HW * 2 + (T + 1) * HW * 2 + (T + 1) * 4
                        + num_cores * (T + 1) * HW * 4 + T * n_pad * 4))

    sal_part, p_pad = pl.pallas_call(
        functools.partial(_rise_kernel, n_targets=T),
        out_shape=(jax.ShapeDtypeStruct((num_cores, T + 1, HW), jnp.float32),
                   jax.ShapeDtypeStruct((T, n_pad), jnp.float32)),
        grid=(num_cores, tiles_per_core),
        in_specs=[
            # mask stream: each core walks its own disjoint range of N-tiles
            pl.BlockSpec((tile_n, HW), lambda c, i: (c * tiles_per_core + i, 0)),
            pl.BlockSpec((T + 1, HW), lambda c, i: (0, 0)),   # xproj (constant)
            pl.BlockSpec((T + 1, 1), lambda c, i: (0, 0)),    # bias  (constant)
        ],
        out_specs=(
            # per-core partial (T+1, HW) slab, resident across the N-tile loop
            pl.BlockSpec((None, T + 1, HW), lambda c, i: (c, 0, 0)),
            # lane-dense p blocks, one per grid step
            pl.BlockSpec((T, tile_n), lambda c, i: (0, c * tiles_per_core + i)),
        ),
        compiler_params=pltpu.CompilerParams(
            dimension_semantics=("parallel", "arbitrary"),
            vmem_limit_bytes=vmem_limit),
        cost_estimate=cost,
    )(masks_bf16, xproj_aug, b_aug)

    # Combine per-core partial slabs (tiny) and normalize in plain XLA.
    sal_and_sum = sal_part.sum(axis=0)                            # (T+1, HW)
    mask_sum = jnp.maximum(sal_and_sum[T:T + 1], 1e-12)           # guard empty pixels
    sal = (sal_and_sum[:T] / mask_sum).reshape(T, 1, H, W)
    p = p_pad.T[:N]                                               # (N, T)
    return sal, p


def rise_sweep_reference(x, masks, w_full, b_full, target):
    """Literal pure-JAX replica of the PyTorch forward (for validation)."""
    N = masks.shape[0]
    _, _, H, W = x.shape
    tgt = jnp.asarray(target)
    stack = masks * x                                             # (N, C, H, W)
    logits = (jnp.einsum('kc,nchw->nkhw', w_full, stack)
              + b_full[None, :, None, None])                      # model(stack)
    p = logits[:, tgt].sum(-1).sum(-1)                            # (N, T)
    sal = p.T @ masks.reshape(N, H * W)                           # (T, H*W)
    sal = sal.reshape(len(target), 1, H, W)
    mask_sum = masks.sum(0, keepdims=True)                        # (1, 1, H, W)
    return sal / mask_sum, p


if __name__ == "__main__":
    key = jax.random.PRNGKey(0)
    k_x, k_m, k_w, k_b = jax.random.split(key, 4)

    C, H, W = 4, 16, 16          # input_size = (16, 16)
    N = 512                      # number of RISE masks
    num_classes = 10
    target = (3, 7)

    x = jax.random.normal(k_x, (1, C, H, W), dtype=jnp.float32)

    # Deterministic RISE-style binary masks; mask 0 is all-ones so mask_sum > 0
    # everywhere (the reference divides by it directly).
    masks = jax.random.bernoulli(k_m, 0.5, (N, 1, H, W)).astype(jnp.float32)
    masks = masks.at[0].set(1.0)

    # Deterministic synthetic "model": 1x1-conv per-pixel classifier.
    w_full = jax.random.normal(k_w, (num_classes, C), dtype=jnp.float32) / jnp.sqrt(C)
    b_full = jax.random.normal(k_b, (num_classes,), dtype=jnp.float32)

    sal, p = rise_sweep_forward(x, masks, w_full, b_full,
                                target=target, tile_n=128, num_cores=2)
    sal = jax.block_until_ready(sal)

    sal_ref, p_ref = rise_sweep_reference(x, masks, w_full, b_full, target)

    assert sal.shape == (len(target), 1, H, W)
    assert p.shape == (N, len(target))
    assert bool(jnp.all(jnp.isfinite(sal))) and bool(jnp.all(jnp.isfinite(p)))

    def rel_err(a, b):
        return float(jnp.linalg.norm((a - b).ravel())
                     / (jnp.linalg.norm(b.ravel()) + 1e-12))

    # bf16 streaming of masks/xproj bounds the error to ~1e-3 relative.
    assert rel_err(p, p_ref) < 1e-2, rel_err(p, p_ref)
    assert rel_err(sal, sal_ref) < 1e-2, rel_err(sal, sal_ref)
    assert bool(jnp.allclose(p, p_ref, rtol=2e-2, atol=5e-1))
    assert bool(jnp.allclose(sal, sal_ref, rtol=2e-2, atol=5e-1))
    print("KERNEL_OK")
</pallas_src>

<mosaic_0001>
module attributes {stable_mosaic.version = 11 : i64} {
  func.func @_rise_kernel(%arg0: i32, %arg1: i32, %arg2: memref<128x256xbf16, #tpu.memory_space<vmem>>, %arg3: memref<3x256xbf16, #tpu.memory_space<vmem>>, %arg4: memref<3x1xf32, #tpu.memory_space<vmem>>, %arg5: memref<1x3x256xf32, #tpu.memory_space<vmem>>, %arg6: memref<2x128xf32, #tpu.memory_space<vmem>>) attributes {dimension_semantics = [#tpu.dimension_semantics<parallel>, #tpu.dimension_semantics<arbitrary>], iteration_bounds = array<i64: 2, 2>, scalar_prefetch = 0 : i64, scratch_operands = 0 : i64, tpu.core_type = #tpu.core_type<tc>, window_params = [{transform_indices = @transform_0, window_bounds = array<i64: 128, 256>}, {pipeline_mode = #tpu.pipeline_mode<synchronous>, transform_indices = @transform_1, window_bounds = array<i64: 3, 256>}, {pipeline_mode = #tpu.pipeline_mode<synchronous>, transform_indices = @transform_2, window_bounds = array<i64: 3, 1>}, {transform_indices = @transform_3, window_bounds = array<i64: 1, 3, 256>}, {transform_indices = @transform_4, window_bounds = array<i64: 2, 128>}]} {
    %c0_i32 = arith.constant 0 : i32
    %0 = arith.cmpi eq, %arg1, %c0_i32 : i32
    %1 = arith.extui %0 : i1 to i32
    %c0_i32_0 = arith.constant 0 : i32
    %2 = arith.cmpi ne, %1, %c0_i32_0 : i32
    scf.if %2 {
      %cst_15 = arith.constant 0.000000e+00 : f32
      %19 = vector.broadcast %cst_15 : f32 to vector<3x256xf32>
      %c0_16 = arith.constant 0 : index
      %c0_17 = arith.constant 0 : index
      %c0_18 = arith.constant 0 : index
      %20 = vector.load %arg5[%c0_16, %c0_17, %c0_18] : memref<1x3x256xf32, #tpu.memory_space<vmem>>, vector<1x3x256xf32>
      %21 = vector.shape_cast %20 : vector<1x3x256xf32> to vector<3x256xf32>
      %22 = vector.shape_cast %19 : vector<3x256xf32> to vector<1x3x256xf32>
      tpu.vector_store %arg5[%c0_16, %c0_17, %c0_18], %22 {strides = array<i32>} : memref<1x3x256xf32, #tpu.memory_space<vmem>>, vector<1x3x256xf32>,
    } else {
    }
    %c0 = arith.constant 0 : index
    %c0_1 = arith.constant 0 : index
    %3 = vector.load %arg2[%c0, %c0_1] : memref<128x256xbf16, #tpu.memory_space<vmem>>, vector<128x256xbf16>
    %c0_2 = arith.constant 0 : index
    %c0_3 = arith.constant 0 : index
    %4 = vector.load %arg3[%c0_2, %c0_3] : memref<3x256xbf16, #tpu.memory_space<vmem>>, vector<3x256xbf16>
    %cst = arith.constant dense<0.000000e+00> : vector<3x128xf32>
    %5 = tpu.matmul %4, %3, %cst {dimension_numbers = #tpu.dot_dimension_numbers<[1], [1], [0], [0], [0, 0, 1, 0], [], []>} : vector<3x256xbf16>, vector<128x256xbf16>, vector<3x128xf32> -> vector<3x128xf32>
    %c0_4 = arith.constant 0 : index
    %c0_5 = arith.constant 0 : index
    %6 = vector.load %arg4[%c0_4, %c0_5] : memref<3x1xf32, #tpu.memory_space<vmem>>, vector<3x1xf32>
    %7 = vector.broadcast %6 : vector<3x1xf32> to vector<3x128xf32>
    %8 = arith.addf %5, %7 : vector<3x128xf32>
    %9 = vector.extract_strided_slice %8 {offsets = [0, 0], sizes = [2, 128], strides = [1, 1]} : vector<3x128xf32> to vector<2x128xf32>
    %c0_6 = arith.constant 0 : index
    %c0_7 = arith.constant 0 : index
    %10 = vector.load %arg6[%c0_6, %c0_7] : memref<2x128xf32, #tpu.memory_space<vmem>>, vector<2x128xf32>
    tpu.vector_store %arg6[%c0_6, %c0_7], %9 {strides = array<i32>} : memref<2x128xf32, #tpu.memory_space<vmem>>, vector<2x128xf32>,
    %c0_8 = arith.constant 0 : index
    %c0_9 = arith.constant 0 : index
    %c0_10 = arith.constant 0 : index
    %11 = vector.load %arg5[%c0_8, %c0_9, %c0_10] : memref<1x3x256xf32, #tpu.memory_space<vmem>>, vector<1x3x256xf32>
    %12 = vector.shape_cast %11 : vector<1x3x256xf32> to vector<3x256xf32>
    %13 = arith.truncf %8 : vector<3x128xf32> to vector<3x128xbf16>
    %cst_11 = arith.constant dense<0.000000e+00> : vector<3x256xf32>
    %14 = tpu.matmul %13, %3, %cst_11 {dimension_numbers = #tpu.dot_dimension_numbers<[1], [0], [0], [1], [0, 0, 1, 1], [], []>} : vector<3x128xbf16>, vector<128x256xbf16>, vector<3x256xf32> -> vector<3x256xf32>
    %15 = arith.addf %12, %14 : vector<3x256xf32>
    %c0_12 = arith.constant 0 : index
    %c0_13 = arith.constant 0 : index
    %c0_14 = arith.constant 0 : index
    %16 = vector.load %arg5[%c0_12, %c0_13, %c0_14] : memref<1x3x256xf32, #tpu.memory_space<vmem>>, vector<1x3x256xf32>
    %17 = vector.shape_cast %16 : vector<1x3x256xf32> to vector<3x256xf32>
    %18 = vector.shape_cast %15 : vector<3x256xf32> to vector<1x3x256xf32>
    tpu.vector_store %arg5[%c0_12, %c0_13, %c0_14], %18 {strides = array<i32>} : memref<1x3x256xf32, #tpu.memory_space<vmem>>, vector<1x3x256xf32>,
    return
  }
  func.func @transform_0(%arg0: i32, %arg1: i32) -> (i32, i32) {
    %c2_i32 = arith.constant 2 : i32
    %0 = arith.muli %arg0, %c2_i32 : i32
    %1 = arith.addi %0, %arg1 : i32
    %c0_i32 = arith.constant 0 : i32
    %c0_i32_0 = arith.constant 0 : i32
    return %1, %c0_i32 : i32, i32
  }
  func.func @transform_1(%arg0: i32, %arg1: i32) -> (i32, i32) {
    %c0_i32 = arith.constant 0 : i32
    %c0_i32_0 = arith.constant 0 : i32
    %c0_i32_1 = arith.constant 0 : i32
    return %c0_i32, %c0_i32_0 : i32, i32
  }
  func.func @transform_2(%arg0: i32, %arg1: i32) -> (i32, i32) {
    %c0_i32 = arith.constant 0 : i32
    %c0_i32_0 = arith.constant 0 : i32
    %c0_i32_1 = arith.constant 0 : i32
    return %c0_i32, %c0_i32_0 : i32, i32
  }
  func.func @transform_3(%arg0: i32, %arg1: i32) -> (i32, i32, i32) {
    %c0_i32 = arith.constant 0 : i32
    %c0_i32_0 = arith.constant 0 : i32
    %c0_i32_1 = arith.constant 0 : i32
    return %arg0, %c0_i32, %c0_i32_0 : i32, i32, i32
  }
  func.func @transform_4(%arg0: i32, %arg1: i32) -> (i32, i32) {
    %c2_i32 = arith.constant 2 : i32
    %0 = arith.muli %arg0, %c2_i32 : i32
    %1 = arith.addi %0, %arg1 : i32
    %c0_i32 = arith.constant 0 : i32
    %c0_i32_0 = arith.constant 0 : i32
    return %c0_i32, %1 : i32, i32
  }
}

</mosaic_0001>

<bundles_post_ra>
// kernel: rise_sweep_forward.1
= control target key start
LH: loop header
LB: loop body
LE: loop exit
PB: predicated region body
PF: predicated region fallthrough
CT: control target
= control target key end

     0   :  { %10 = vsyncpa [#allocation3], 0  ;;  %s1017_s0 = inlined_call_operand.vmem [shape: bf16[512,256], index: 0, kind: input, shape index: {}]   ;;  %s1018_s1 = inlined_call_operand.vmem [shape: bf16[3,256], index: 1, kind: input, shape index: {}]   ;;  %s1019_s2 = inlined_call_operand.vmem [shape: f32[3,1], index: 2, kind: input, shape index: {}]   ;;  %s1020_s3 = inlined_call_operand.vmem [shape: f32[2,3,256], index: 3, kind: output, shape index: {0}]   ;;  %s1021_s4 = inlined_call_operand.hbm [shape: f32[2,512], index: 4, kind: output, shape index: {1}]  }
   0x1   :  { %12 = vsyncpa [#allocation3 + $0x1], 0  ;;  %s840_s15 = smov 0   ;;  %s842_s16 = smov 0  }
   0x2   :  { %s844_s17 = smov 0   ;;  %s846_s18 = smov 0  }
   0x3   :  { %s848_s19 = smov 0   ;;  %s850_s20 = smov 0  }
   0x4   :  { %s852_s21 = smov 0   ;;  %s854_s22 = smov 0  }
   0x5 LB: > { %s577_s23 = sadd.s32 4294967295, %s810_s22   ;;  %s27_s24 = sadd.s32 1, %s802_s20  ;;  %s810_s22 = sphi %s854_s22, %s18_s22   ;;  %s806_s21 = sphi %s852_s21, %s1030_s21   ;;  %s802_s20 = sphi %s850_s20, %s1029_s20   ;;  %s798_s19 = sphi %s848_s19, %s1028_s19   ;;  %s794_s18 = sphi %s846_s18, %s1027_s18   ;;  %s790_s17 = sphi %s844_s17, %s1026_s17   ;;  %s786_s16 = sphi %s842_s16, %s1025_s16   ;;  %s782_s15 = sphi %s840_s15, %s1024_s15  }
   0x6   : > { %s30_s25 = sadd.s32 1, %s806_s21  ;;  %p28_p0 = scmp.ge.s32.totalorder %s27_s24, 2 }
   0x7   : > { %s581_s26 = sshll.u32 %s806_s21, 1  ;;  %s578_s27 = sadd.s32 4294967294, %s810_s22  }
   0x8   : > { %s133_s28 = sadd.s32 %s802_s20, %s581_s26  ;;  %s1032_s24 = smov (%p28_p0, %s27_s24), 0 }
   0x9   : > { %s1034_s25 = smov (!%p28_p0, %s30_s25), %s806_s21  ;;  %p149_p1 = scmp.ne.s32.totalorder %s790_s17, %s786_s16 }
   0xa   : > { %p150_p2 = scmp.eq.s32.totalorder %s577_s23, 3  ;;  %p32_p3 = scmp.ge.s32.totalorder %s1034_s25, 2 }
   0xb   : > { %p155_p4 = scmp.ne.s32.totalorder %s786_s16, %s782_s15  ;;  %p156_p6 = scmp.eq.s32.totalorder %s578_s27, 3 }
   0xc   : > { %p893_p5 = por %p150_p2, %p149_p1  ;;  %s1036_s25 = smov (%p32_p3, %s1034_s25), 0 }
   0xd   : > { %p899_p7 = por %p156_p6, %p155_p4  ;;  %p585_p8 = scmp.ge.s32.totalorder %s810_s22, 1 }
   0xe   : > { %s582_s5 = sshll.u32 %s1036_s25, 1  ;;  %p194_p9 = scmp.lt.s32.totalorder %s810_s22, 5 }
   0xf   : > { %s135_s6 = sadd.s32 %s582_s5, %s1032_s24  ;;  %s139_s7 = sadd.s32 1, %s790_s17 }
  0x10   : > { %s136_s8 = ssub.s32 %s133_s28, %s135_s6  ;;  %p195_p10 = pnand %p585_p8, %p194_p9 }
  0x11   : > { %p137_p11 = scmp.eq.s32.totalorder %s136_s8, 0  ;;  %s225_s10 = sand.u32 (!%p195_p10), 1, %s786_s16  }
  0x12   : > { %198 = sbr.rel (%p195_p10) target bundleno = 535 (0x217), region = 32  ;;  %s587_s11 = sshll.u32 (!%p195_p10), %s798_s19, 1 }
  0x13   : > { %s909_s9 = scalar_select %p137_p11, %s790_s17, %s139_s7  }
  0x14   : > { %s915_s12 = sshll.u32 (!%p195_p10), %s225_s10, 1  ;;  %s918_s13 = sadd.s32 (!%p195_p10), %s794_s18, %s587_s11 }
  0x15   : > { %s588_s14 = sshll.u32 (!%p195_p10), %s918_s13, 4  ;;  %p239_p13 = scmp.lt.s32.totalorder (!%p195_p10), %s798_s19, 1 }
  0x16   : > { %p231_p12 = scmp.lt.s32.totalorder (!%p195_p10), %s588_s14, 63  ;;  %s227_s11 = scalar_lea.vmem (!%p195_p10), [#allocation2], %s915_s12 }
  0x17   : > { %p593_p0 = scmp.ne.s32.totalorder (!%p195_p10), %s794_s18, 0 }
  0x19   : > { %s1038_s14 = smov (!%p231_p12, %s588_s14), 63  ;;  %s1040_s19 = smov (!%p239_p13, %s798_s19), 1 }
  0x1a   : > { %s616_s23 = sshll.u32 %s1038_s14, 3  ;;  %s617_s5 = sshll.u32 %s1040_s19, 3  ;;  %v812_v0 = vmov (!%p593_p0), 0.0  }
  0x1b   : > { %s926_s28 = scalar_lea.vmem %s1017_s0, %s616_s23  ;;  %s931_s8 = scalar_lea.vmem %s1020_s3, %s617_s5 }
  0x1c   : > { %250 = sbr.rel (%p593_p0) target bundleno = 35 (0x23), region = 36  ;;  %251 = vst [vmem:[%s931_s8] sm:$0x77] (!%p593_p0), %v812_v0 }
  0x23 PF: > { %v692_v1 = vld [vmem:[%s926_s28 + $0x4] ss:$8 sps:$4 sm:$0xff]   ;;  %v694_v2 = vld [vmem:[%s926_s28] ss:$8 sps:$4 sm:$0xff]   ;;  %v813_v3 = vmov 0   ;;  %s613_s26 = sshll.u32 %s918_s13, 5 }
  0x24   : > { %691 = vset.pattern.permute.xlu0 %v813_v3  ;;  %441 = vmatprep.mubr.bf16.mxu1 %v813_v3  ;;  %v695_v4 = vld [vmem:[%s926_s28 + $0x14] ss:$8 sps:$4 sm:$0xff]   ;;  %v697_v5 = vld [vmem:[%s926_s28 + $0x10] ss:$8 sps:$4 sm:$0xff]   ;;  %v698_v6 = vld [vmem:[%s926_s28 + $0x24] ss:$8 sps:$4 sm:$0xff]   ;;  %s966_s6 = scalar_lea.hbm %s1021_s4, %s613_s26 }
  0x25   : > { %366 = vmatprep.subr.bf16.mxu0 %v692_v1  ;;  %409 = vmatprep.subr.bf16.mxu1 %v692_v1  ;;  %v700_v7 = vld [vmem:[%s926_s28 + $0x20] ss:$8 sps:$4 sm:$0xff]   ;;  %v701_v9 = vld [vmem:[%s926_s28 + $0x34] ss:$8 sps:$4 sm:$0xff]   ;;  %v703_v12 = vld [vmem:[%s926_s28 + $0x30] ss:$8 sps:$4 sm:$0xff]  }
  0x26   : > { %367 = vmatpush1.bf16.xpose.msra.mxu0 %v694_v2  ;;  %410 = vmatpush1.bf16.msra.mxu1 %v694_v2  ;;  %v269_v8 = vld [vmem:[%s1019_s2] sm:$0x7]  ;;  %v704_v13 = vld [vmem:[%s926_s28 + $0x44] ss:$8 sps:$4 sm:$0xff]   ;;  %v707_v15 = vld [vmem:[%s926_s28 + $0x54] ss:$8 sps:$4 sm:$0xff]  }
  0x27   : > { %368 = vmatprep.subr.bf16.mxu0 %v695_v4  ;;  %411 = vmatprep.subr.bf16.mxu1 %v695_v4  ;;  %v594_v10 = vld.sshfl [vmem:[%s1018_s1] sm:$0x33 pattern:$0x76325410]  ;;  %v709_v16 = vld [vmem:[%s926_s28 + $0x50] ss:$8 sps:$4 sm:$0xff]  }
  0x28   : > { %272 = vperm.xlu0 %691, %v269_v8   ;;  %v283_v11 = vcombine.high %v594_v10, %v594_v10  ;;  %v706_v14 = vld [vmem:[%s926_s28 + $0x40] ss:$8 sps:$4 sm:$0xff]   ;;  %v710_v17 = vld [vmem:[%s926_s28 + $0x64] ss:$8 sps:$4 sm:$0xff]   ;;  %v713_v19 = vld [vmem:[%s926_s28 + $0x74] ss:$8 sps:$4 sm:$0xff]  }
  0x29   : > { %v712_v18 = vld [vmem:[%s926_s28 + $0x60] ss:$8 sps:$4 sm:$0xff]   ;;  %v715_v20 = vld [vmem:[%s926_s28 + $0x70] ss:$8 sps:$4 sm:$0xff]   ;;  %s480_s27 = sshll.u32 %s227_s11, 4  ;;  %s462_s7 = scalar_lea.sflag [#allocation3], %s225_s10  ;;  %s481_s27 = int_to_ptr.vmem [resolvable:$true] %s480_s27 }
  0x2a   : > { %412 = vmatpush1.bf16.msra.mxu1 %v697_v5  ;;  %398 = vmatprep.mubr.bf16.mxu0 %v283_v11  ;;  %s716_s18 = scalar_lea.vmem %s481_s27, 32  ;;  %s814_s19 = smov [#allocation2]  }
  0x2b   : > { %413 = vmatprep.subr.bf16.mxu1 %v698_v6  ;;  %p717_p1 = scmp.ne.s32.totalorder %s481_s27, %s716_s18  ;;  %s720_s14 = sshll.u32 %s814_s19, 4  ;;  %s721_s14 = int_to_ptr.vmem [resolvable:$false] %s720_s14 }
  0x2c   : > { %s722_s23 = scalar_lea.vmem %s721_s14, 64  ;;  %p723_p4 = scmp.lt.s32.totalorder %s481_s27, %s721_s14 }
  0x2d   : > { %p718_p2 = pnand %p717_p1, %p893_p5  ;;  %p724_p6 = scmp.lt.s32.totalorder %s722_s23, %s716_s18 }
  0x2e   : > { %369 = vmatpush1.bf16.xpose.msra.mxu0 %v697_v5  ;;  %414 = vmatpush1.bf16.msra.mxu1 %v700_v7 }
  0x2f   : > { %370 = vmatprep.subr.bf16.mxu0 %v698_v6  ;;  %415 = vmatprep.subr.bf16.mxu1 %v701_v9  ;;  %p719_p3 = pneg %p718_p2  ;;  %p725_p8 = por %p724_p6, %p723_p4 }
  0x31   : > { %p726_p9 = pnand %p725_p8, %p719_p3 }
  0x32   : > { %416 = vmatpush1.bf16.msra.mxu1 %v703_v12 }
  0x33   : > { %417 = vmatprep.subr.bf16.mxu1 %v704_v13 }
  0x36   : > { %371 = vmatpush1.bf16.xpose.msra.mxu0 %v700_v7  ;;  %418 = vmatpush1.bf16.msra.mxu1 %v706_v14 }
  0x37   : > { %372 = vmatprep.subr.bf16.mxu0 %v701_v9  ;;  %419 = vmatprep.subr.bf16.mxu1 %v707_v15 }
  0x3a   : > { %420 = vmatpush1.bf16.msra.mxu1 %v709_v16 }
  0x3b   : > { %421 = vmatprep.subr.bf16.mxu1 %v710_v17 }
  0x3e   : > { %373 = vmatpush1.bf16.xpose.msra.mxu0 %v703_v12  ;;  %422 = vmatpush1.bf16.msra.mxu1 %v712_v18 }
  0x3f   : > { %374 = vmatprep.subr.bf16.mxu0 %v704_v13  ;;  %423 = vmatprep.subr.bf16.mxu1 %v713_v19 }
  0x42   : > { %424 = vmatpush1.bf16.msra.mxu1 %v715_v20 }
  0x46   : > { %375 = vmatpush1.bf16.xpose.msra.mxu0 %v706_v14 }
  0x47   : > { %376 = vmatprep.subr.bf16.mxu0 %v707_v15 }
  0x4e   : > { %377 = vmatpush1.bf16.xpose.msra.mxu0 %v709_v16 }
  0x4f   : > { %378 = vmatprep.subr.bf16.mxu0 %v710_v17 }
  0x56   : > { %379 = vmatpush1.bf16.xpose.msra.mxu0 %v712_v18 }
  0x57   : > { %380 = vmatprep.subr.bf16.mxu0 %v713_v19 }
  0x5e   : > { %381 = vmatpush1.bf16.xpose.msra.mxu0 %v715_v20 }
  0x65   : > { %399 = vmatmul.mubr.bf16.vlgmr.msra.gmra.mrb[0].mxu0 %v594_v10 }
  0xa7   : > { %v273_v21 = vpop.permute.xlu0 %272 }
 0x138   : > { %v400_v22 = vpop.f32.mrb[0].mxu0 }
 0x139   : > { %v401_v23 = vadd.f32 %v400_v22, %v273_v21  ;;  %v402_v24 = vpop.f32.mrb[1].mxu0 }
 0x13a   : > { %v403_v25 = vpop.f32.mrb[2].mxu0 }
 0x13b   : > { %406 = vst [vmem:[%s227_s11] sm:$0x3] %v401_v23  ;;  %v408_v26 = vpack.c.bf16 %v401_v23, %v401_v23  ;;  %v404_v27 = vpop.f32.mrb[3].mxu0 }
 0x13d   : > { %442 = vmatmul.mubr.bf16.vlgmr.msra.gmra.mrb[0].mxu1 %v408_v26 }
 0x13e   : > { %729 = shalt.err (!%p726_p9)
}
 0x13f   : > { %s730_s10 = scalar_lea.hbm %s966_s6, 32  ;;  %s734_s11 = scalar_lea.hbm %s1021_s4, 128 }
 0x140   : > { %p731_p10 = scmp.ne.s32.totalorder %s966_s6, %s730_s10  ;;  %p735_p13 = scmp.lt.u32.totalorder %s966_s6, %s1021_s4 }
 0x141   : > { %p736_p0 = scmp.lt.u32.totalorder %s734_s11, %s730_s10  ;;  %p738_p2 = scmp.lt.u32.totalorder %s730_s10, %s966_s6 }
 0x142   : > { %p732_p11 = pnand %p731_p10, %p893_p5 }
 0x143   : > { %p737_p1 = por %p736_p0, %p735_p13 }
 0x144   : > { %p733_p12 = pneg %p732_p11 }
 0x145   : > { %p739_p3 = por %p738_p2, %p737_p1 }
 0x147   : > { %p740_p4 = pnand %p739_p3, %p733_p12 }
 0x149   : > { %743 = shalt.err (!%p740_p4)
}
 0x14a   : > { %618 = dma.vmem_to_hbm [thread:$0]  (%p893_p5), %s481_s27, 32, %s966_s6, %s462_s7   ;;  %v407_v29 = vld [vmem:[%s931_s8] sm:$0x77] }
 0x210   : > { %v443_v28 = vpop.f32.mrb[0].mxu1 }
 0x211   : > { %v445_v30 = vpop.f32.mrb[1].mxu1 }
 0x212   : > { %v452_v31 = vcombine.low %v443_v28, %v445_v30  ;;  %v447_v32 = vpop.f32.mrb[2].mxu1 }
 0x213   : > { %v448_v33 = vpop.f32.mrb[3].mxu1 }
 0x214   : > { %v454_v34 = vadd.f32 %v452_v31, %v407_v29 }
 0x216   : > { %455 = vst [vmem:[%s931_s8] sm:$0x77] %v454_v34 }
 0x217 PF: > { %p624_p6 = scmp.ge.s32.totalorder %s810_s22, 2  ;;  %s500_s5 = sand.u32 1, %s782_s15  }
 0x218   : > { %s501_s29 = scalar_lea.sflag [#allocation3], %s500_s5 }
 0x219   : > { %p621_p8 = pnand %p624_p6, %p899_p7 }
 0x21b   : > { %777 = dma.done.wait (!%p621_p8), %s501_s29, 32  }
 0x21c   : > { %779 = vsyncadd (!%p621_p8), %s501_s29, 4294967264  ;;  %s18_s22 = sadd.s32 1, %s810_s22   ;;  %s1024_s15 = smov %s786_s16 }
 0x21d   : > { %p15_p5 = scmp.ge.s32.totalorder %s18_s22, 6   ;;  %s1025_s16 = smov %s790_s17 }
 0x21e   : > { %s1026_s17 = smov %s909_s9  ;;  %s1027_s18 = smov %s802_s20 }
 0x21f   : > { %s1028_s19 = smov %s806_s21  ;;  %s1029_s20 = smov %s1032_s24 }
 0x220   : > { %s1030_s21 = smov %s1036_s25  ;;  %17 = sbr.rel (!%p15_p5) target bundleno = 5 (0x5), region = 83 }
 0x227   :  { %506 = vsyncpa [#allocation3], 1 }
 0x228   :  { %508 = vsyncpa [#allocation3 + $0x1], 1 }

</bundles_post_ra>
